<compile_context>
chip_gen: v5e
topology: v5e:2x2
jax: 0.10.0
libtpu: 0.0.40
codegen_flags: <defaults>
</compile_context>

<pallas_src>
import functools

import jax
import jax.numpy as jnp
from jax.experimental import pallas as pl
from jax.experimental.pallas import tpu as pltpu


def _conv_stats_kernel(x_ref, w_ref, conv_ref, stats_ref, xpad_ref, *,
                       K, dilation, padding):
    """Dilated conv (no bias) + fused partial BatchNorm stats for one batch tile.

    x_ref:     (Bt, C_in, L)        input tile (compute dtype)
    w_ref:     (K, C_out, C_in)     per-tap weights (compute dtype)
    conv_ref:  (Bt, C_out, L_conv)  FULL pre-chomp conv output, lane-dense store
    stats_ref: (1, C_out, 2)        [...,0]=sum, [...,1]=sum of squares over the
                                    full (Bt, L_conv) pre-chomp window
    xpad_ref:  (Bt, C_in, L_pad)    VMEM scratch holding the zero-padded input
    """
    Bt, C_in, L = x_ref.shape
    C_out = w_ref.shape[1]
    L_pad = xpad_ref.shape[-1]
    L_conv = L_pad - dilation * (K - 1)

    # Fold zero padding into the kernel: zero ONLY the 2*padding edge columns
    # (tiny), then overwrite the interior with this step's input tile.
    if padding > 0:
        zeros_edge = jnp.zeros((Bt, C_in, padding), dtype=xpad_ref.dtype)
        xpad_ref[:, :, pl.ds(0, padding)] = zeros_edge
        xpad_ref[:, :, pl.ds(padding + L, padding)] = zeros_edge
    xpad_ref[:, :, pl.ds(padding, L)] = x_ref[...]

    # K unrolled matmuls accumulated in f32.  With contraction depth C_in far
    # below the MXU size, stacking taps (im2col) buys nothing and would cost an
    # extra VMEM copy per step.
    y = None
    for k in range(K):
        xk = xpad_ref[:, :, pl.ds(k * dilation, L_conv)]       # (Bt, C_in, L_conv)
        wk = jnp.broadcast_to(w_ref[k], (Bt, C_out, C_in))      # tiny, traced once
        part = jnp.einsum('boc,bcl->bol', wk, xk,
                          preferred_element_type=jnp.float32)
        y = part if y is None else y + part                     # (Bt, C_out, L_conv) f32

    # Fused partial BN statistics over the FULL pre-chomp window (BatchNorm runs
    # before Chomp1d in the reference module), computed while y is live in vregs.
    ysum = jnp.sum(jnp.sum(y, axis=0), axis=-1, keepdims=True)       # (C_out, 1)
    ysq = jnp.sum(jnp.sum(y * y, axis=0), axis=-1, keepdims=True)    # (C_out, 1)
    stats_ref[0, :, 0:1] = ysum
    stats_ref[0, :, 1:2] = ysq

    # Lane-dense store of the full pre-chomp block from lane 0; the symmetric
    # chomp is deferred to pass 2 (keeps pass-1 stores offset-free).
    conv_ref[...] = y.astype(conv_ref.dtype)


def _bn_act_kernel(conv_ref, scale_ref, shift_ref, alpha_ref, o_ref, *,
                   chomp_off, relu_type):
    """Normalize + symmetric chomp + PReLU/ReLU on one (Bt, C_out, *) batch tile."""
    # TODO(synk): for production L, tile the (batch x L) plane with >=512-lane
    # blocks; at these toy sizes the (8,128) rule forces full-extent blocks.
    L_final = o_ref.shape[-1]
    y = conv_ref[:, :, pl.ds(chomp_off, L_final)].astype(jnp.float32)
    y = y * scale_ref[...] + shift_ref[...]          # (C_out,1) broadcasts over lanes
    if relu_type == 'prelu':
        y = jnp.where(y > 0, y, alpha_ref[...] * y)
    else:
        y = jnp.maximum(y, 0.0)
    o_ref[...] = y.astype(o_ref.dtype)


def conv_batch_chomp_relu(x, w, bias, gamma, beta, alpha, *,
                          stride=1, dilation=1, padding=2, relu_type='prelu',
                          eps=1e-5, compute_dtype=jnp.bfloat16, batch_tile=None):
    """Forward pass of ConvBatchChompRelu (dwpw=False), BatchNorm in train mode.

    `bias` is accepted for interface parity with nn.Conv1d but never enters the
    kernels: a per-channel conv bias cancels exactly under train-mode BatchNorm.
    """
    del bias
    assert stride == 1  # TODO(synk): stride > 1 (strided conv) not implemented in-kernel
    B, C_in, L = x.shape
    C_out, _, K = w.shape
    assert padding % 2 == 0, "symmetric chomp requires even padding"

    L_pad = L + 2 * padding
    L_conv = L_pad - dilation * (K - 1)          # stride == 1
    L_final = L_conv - padding
    chomp_off = padding // 2                     # symmetric chomp offset

    if batch_tile is None:
        batch_tile = min(B, 8)
    assert B % batch_tile == 0, "batch_tile must divide batch"
    n_steps = B // batch_tile

    xc = x.astype(compute_dtype)
    # (C_out, C_in, K) -> (K, C_out, C_in): one (C_out, C_in) matmul LHS per tap.
    wk = jnp.transpose(w, (2, 0, 1)).astype(compute_dtype)

    # TODO(synk): per-generation tile sizing -- on v7x (64 MiB VMEM) keep the
    # double-buffered working set under ~28 MiB; on v5e/v6e (128 MiB) larger
    # L/batch tiles and a higher vmem_limit_bytes pay off.
    cparams = pltpu.CompilerParams(
        dimension_semantics=("parallel",),        # batch tiles shard over TCs on v7x
        vmem_limit_bytes=32 * 1024 * 1024,
    )

    # ---- pass 1: dilated conv + fused partial BN stats, pipelined over batch tiles ----
    conv_out, stats = pl.pallas_call(
        functools.partial(_conv_stats_kernel, K=K, dilation=dilation,
                          padding=padding),
        out_shape=(
            jax.ShapeDtypeStruct((B, C_out, L_conv), compute_dtype),
            jax.ShapeDtypeStruct((n_steps, C_out, 2), jnp.float32),
        ),
        grid_spec=pltpu.PrefetchScalarGridSpec(
            num_scalar_prefetch=0,
            grid=(n_steps,),
            in_specs=[
                pl.BlockSpec((batch_tile, C_in, L), lambda b: (b, 0, 0)),
                pl.BlockSpec((K, C_out, C_in), lambda b: (0, 0, 0)),
            ],
            out_specs=(
                pl.BlockSpec((batch_tile, C_out, L_conv), lambda b: (b, 0, 0)),
                pl.BlockSpec((1, C_out, 2), lambda b: (b, 0, 0)),
            ),
            scratch_shapes=[pltpu.VMEM((batch_tile, C_in, L_pad), compute_dtype)],
        ),
        compiler_params=cparams,
    )(xc, wk)

    # ---- tiny XLA glue: per-channel BN scale/shift from the batch statistics ----
    # Kept outside the kernels so the batch grid axis stays "parallel".
    # TODO(synk): for very long sequences compute variance from centered values
    # (two-pass / Welford) -- E[x^2]-E[x]^2 is cancellation-prone; clamp guards it.
    n = float(B * L_conv)
    totals = jnp.sum(stats, axis=0)                                   # (C_out, 2)
    mean = totals[:, 0:1] / n                                         # (C_out, 1)
    var = jnp.maximum(totals[:, 1:2] / n - mean * mean, 0.0)
    inv = jax.lax.rsqrt(var + eps)
    scale = gamma.reshape(C_out, 1).astype(jnp.float32) * inv         # (C_out, 1)
    shift = beta.reshape(C_out, 1).astype(jnp.float32) - mean * scale
    alpha2 = alpha.reshape(C_out, 1).astype(jnp.float32)

    # ---- pass 2: normalize + symmetric chomp + activation (HBM-bound) ----
    out = pl.pallas_call(
        functools.partial(_bn_act_kernel, chomp_off=chomp_off,
                          relu_type=relu_type),
        out_shape=jax.ShapeDtypeStruct((B, C_out, L_final), jnp.float32),
        grid_spec=pltpu.PrefetchScalarGridSpec(
            num_scalar_prefetch=0,
            grid=(n_steps,),
            in_specs=[
                pl.BlockSpec((batch_tile, C_out, L_conv), lambda b: (b, 0, 0)),
                pl.BlockSpec((C_out, 1), lambda b: (0, 0)),
                pl.BlockSpec((C_out, 1), lambda b: (0, 0)),
                pl.BlockSpec((C_out, 1), lambda b: (0, 0)),
            ],
            out_specs=pl.BlockSpec((batch_tile, C_out, L_final),
                                   lambda b: (b, 0, 0)),
        ),
        compiler_params=cparams,
    )(conv_out, scale, shift, alpha2)
    return out


def _reference(x, w, bias, gamma, beta, alpha, *, stride, dilation, padding,
               relu_type, eps):
    out = jax.lax.conv_general_dilated(
        x, w, window_strides=(stride,), padding=[(padding, padding)],
        rhs_dilation=(dilation,), dimension_numbers=('NCH', 'OIH', 'NCH'))
    out = out + bias[None, :, None]
    mean = out.mean(axis=(0, 2), keepdims=True)
    var = ((out - mean) ** 2).mean(axis=(0, 2), keepdims=True)
    out = (out - mean) / jnp.sqrt(var + eps)
    out = out * gamma[None, :, None] + beta[None, :, None]
    if padding > 0:
        c = padding // 2
        out = out[:, :, c:out.shape[2] - c]
    if relu_type == 'prelu':
        out = jnp.where(out > 0, out, alpha[None, :, None] * out)
    else:
        out = jnp.maximum(out, 0.0)
    return out


if __name__ == "__main__":
    # Module config (dwpw=False path): n_inputs=4, n_outputs=8, kernel_size=3,
    # stride=1, dilation=1, padding=(kernel_size-1)*dilation=2, relu_type='prelu'.
    B, C_in, C_out, L, K = 2, 4, 8, 16, 3
    stride, dilation, relu_type = 1, 1, 'prelu'
    padding = (K - 1) * dilation

    key = jax.random.PRNGKey(0)
    kx, kw, kb, kg, kbe = jax.random.split(key, 5)
    x = jax.random.normal(kx, (B, C_in, L), jnp.float32)
    w = jax.random.normal(kw, (C_out, C_in, K), jnp.float32) * 0.3
    bias = jax.random.normal(kb, (C_out,), jnp.float32) * 0.1
    gamma = 1.0 + 0.1 * jax.random.normal(kg, (C_out,), jnp.float32)
    beta = 0.1 * jax.random.normal(kbe, (C_out,), jnp.float32)
    alpha = jnp.full((C_out,), 0.25, jnp.float32)   # PReLU default init

    ref = _reference(x, w, bias, gamma, beta, alpha, stride=stride,
                     dilation=dilation, padding=padding,
                     relu_type=relu_type, eps=1e-5)

    # f32 MXU path, batch_tile=1 (2 parallel grid steps) -- tight tolerance.
    fwd_f32 = jax.jit(functools.partial(
        conv_batch_chomp_relu, stride=stride, dilation=dilation, padding=padding,
        relu_type=relu_type, eps=1e-5, compute_dtype=jnp.float32, batch_tile=1))
    out_f32 = jax.block_until_ready(fwd_f32(x, w, bias, gamma, beta, alpha))
    assert out_f32.shape == (B, C_out, L), out_f32.shape
    assert jnp.allclose(out_f32, ref, atol=5e-4, rtol=5e-4), \
        float(jnp.max(jnp.abs(out_f32 - ref)))

    # bf16 MXU path (perf default), batch_tile=2 -- looser tolerance.
    fwd_bf16 = jax.jit(functools.partial(
        conv_batch_chomp_relu, stride=stride, dilation=dilation, padding=padding,
        relu_type=relu_type, eps=1e-5, compute_dtype=jnp.bfloat16, batch_tile=2))
    out_bf16 = jax.block_until_ready(fwd_bf16(x, w, bias, gamma, beta, alpha))
    assert out_bf16.shape == (B, C_out, L), out_bf16.shape
    assert jnp.allclose(out_bf16, ref, atol=5e-2, rtol=5e-2), \
        float(jnp.max(jnp.abs(out_bf16 - ref)))

    print("KERNEL_OK")
</pallas_src>

<mosaic_0001>
module attributes {stable_mosaic.version = 11 : i64} {
  func.func @_conv_stats_kernel(%arg0: i32, %arg1: memref<1x4x16xf32, #tpu.memory_space<vmem>>, %arg2: memref<3x8x4xf32, #tpu.memory_space<vmem>>, %arg3: memref<1x8x18xf32, #tpu.memory_space<vmem>>, %arg4: memref<1x8x2xf32, #tpu.memory_space<vmem>>, %arg5: memref<1x4x20xf32, #tpu.memory_space<vmem>>) attributes {dimension_semantics = [#tpu.dimension_semantics<parallel>], iteration_bounds = array<i64: 2>, scalar_prefetch = 0 : i64, scratch_operands = 1 : i64, tpu.core_type = #tpu.core_type<tc>, window_params = [{transform_indices = @transform_0, window_bounds = array<i64: 1, 4, 16>}, {pipeline_mode = #tpu.pipeline_mode<synchronous>, transform_indices = @transform_1, window_bounds = array<i64: 3, 8, 4>}, {transform_indices = @transform_2, window_bounds = array<i64: 1, 8, 18>}, {transform_indices = @transform_3, window_bounds = array<i64: 1, 8, 2>}]} {
    %cst = arith.constant 0.000000e+00 : f32
    %0 = vector.broadcast %cst : f32 to vector<1x4x2xf32>
    %c0 = arith.constant 0 : index
    %c0_0 = arith.constant 0 : index
    %c0_1 = arith.constant 0 : index
    %1 = vector.load %arg5[%c0, %c0_0, %c0_1] : memref<1x4x20xf32, #tpu.memory_space<vmem>>, vector<1x4x2xf32>
    tpu.vector_store %arg5[%c0, %c0_0, %c0_1], %0 {strides = array<i32>} : memref<1x4x20xf32, #tpu.memory_space<vmem>>, vector<1x4x2xf32>,
    %c0_2 = arith.constant 0 : index
    %c0_3 = arith.constant 0 : index
    %c18 = arith.constant 18 : index
    %2 = vector.load %arg5[%c0_2, %c0_3, %c18] : memref<1x4x20xf32, #tpu.memory_space<vmem>>, vector<1x4x2xf32>
    tpu.vector_store %arg5[%c0_2, %c0_3, %c18], %0 {strides = array<i32>} : memref<1x4x20xf32, #tpu.memory_space<vmem>>, vector<1x4x2xf32>,
    %c0_4 = arith.constant 0 : index
    %c0_5 = arith.constant 0 : index
    %c0_6 = arith.constant 0 : index
    %3 = vector.load %arg1[%c0_4, %c0_5, %c0_6] : memref<1x4x16xf32, #tpu.memory_space<vmem>>, vector<1x4x16xf32>
    %c0_7 = arith.constant 0 : index
    %c0_8 = arith.constant 0 : index
    %c2 = arith.constant 2 : index
    %4 = vector.load %arg5[%c0_7, %c0_8, %c2] : memref<1x4x20xf32, #tpu.memory_space<vmem>>, vector<1x4x16xf32>
    tpu.vector_store %arg5[%c0_7, %c0_8, %c2], %3 {strides = array<i32>} : memref<1x4x20xf32, #tpu.memory_space<vmem>>, vector<1x4x16xf32>,
    %c0_9 = arith.constant 0 : index
    %c0_10 = arith.constant 0 : index
    %c0_11 = arith.constant 0 : index
    %5 = vector.load %arg5[%c0_9, %c0_10, %c0_11] : memref<1x4x20xf32, #tpu.memory_space<vmem>>, vector<1x4x18xf32>
    %c0_12 = arith.constant 0 : index
    %c0_13 = arith.constant 0 : index
    %c0_14 = arith.constant 0 : index
    %6 = vector.load %arg2[%c0_12, %c0_13, %c0_14] : memref<3x8x4xf32, #tpu.memory_space<vmem>>, vector<1x8x4xf32>
    %7 = vector.shape_cast %6 : vector<1x8x4xf32> to vector<8x4xf32>
    %8 = vector.shape_cast %7 : vector<8x4xf32> to vector<1x8x4xf32>
    "tpu.trace_start"() <{level = 10 : i32, message = "boc,bcl->bol"}> : () -> ()
    %cst_15 = arith.constant dense<0.000000e+00> : vector<1x8x18xf32>
    %9 = tpu.matmul %8, %5, %cst_15 {dimension_numbers = #tpu.dot_dimension_numbers<[2], [1], [1], [2], [0, 0, 0, 1, 1, 2], [0], [0]>} : vector<1x8x4xf32>, vector<1x4x18xf32>, vector<1x8x18xf32> -> vector<1x8x18xf32>
    "tpu.trace_stop"() : () -> ()
    %c0_16 = arith.constant 0 : index
    %c0_17 = arith.constant 0 : index
    %c1 = arith.constant 1 : index
    %10 = vector.load %arg5[%c0_16, %c0_17, %c1] : memref<1x4x20xf32, #tpu.memory_space<vmem>>, vector<1x4x18xf32>
    %c1_18 = arith.constant 1 : index
    %c0_19 = arith.constant 0 : index
    %c0_20 = arith.constant 0 : index
    %11 = vector.load %arg2[%c1_18, %c0_19, %c0_20] : memref<3x8x4xf32, #tpu.memory_space<vmem>>, vector<1x8x4xf32>
    %12 = vector.shape_cast %11 : vector<1x8x4xf32> to vector<8x4xf32>
    %13 = vector.shape_cast %12 : vector<8x4xf32> to vector<1x8x4xf32>
    "tpu.trace_start"() <{level = 10 : i32, message = "boc,bcl->bol"}> : () -> ()
    %cst_21 = arith.constant dense<0.000000e+00> : vector<1x8x18xf32>
    %14 = tpu.matmul %13, %10, %cst_21 {dimension_numbers = #tpu.dot_dimension_numbers<[2], [1], [1], [2], [0, 0, 0, 1, 1, 2], [0], [0]>} : vector<1x8x4xf32>, vector<1x4x18xf32>, vector<1x8x18xf32> -> vector<1x8x18xf32>
    "tpu.trace_stop"() : () -> ()
    %15 = arith.addf %9, %14 : vector<1x8x18xf32>
    %c0_22 = arith.constant 0 : index
    %c0_23 = arith.constant 0 : index
    %c2_24 = arith.constant 2 : index
    %16 = vector.load %arg5[%c0_22, %c0_23, %c2_24] : memref<1x4x20xf32, #tpu.memory_space<vmem>>, vector<1x4x18xf32>
    %c2_25 = arith.constant 2 : index
    %c0_26 = arith.constant 0 : index
    %c0_27 = arith.constant 0 : index
    %17 = vector.load %arg2[%c2_25, %c0_26, %c0_27] : memref<3x8x4xf32, #tpu.memory_space<vmem>>, vector<1x8x4xf32>
    %18 = vector.shape_cast %17 : vector<1x8x4xf32> to vector<8x4xf32>
    %19 = vector.shape_cast %18 : vector<8x4xf32> to vector<1x8x4xf32>
    "tpu.trace_start"() <{level = 10 : i32, message = "boc,bcl->bol"}> : () -> ()
    %cst_28 = arith.constant dense<0.000000e+00> : vector<1x8x18xf32>
    %20 = tpu.matmul %19, %16, %cst_28 {dimension_numbers = #tpu.dot_dimension_numbers<[2], [1], [1], [2], [0, 0, 0, 1, 1, 2], [0], [0]>} : vector<1x8x4xf32>, vector<1x4x18xf32>, vector<1x8x18xf32> -> vector<1x8x18xf32>
    "tpu.trace_stop"() : () -> ()
    %21 = arith.addf %15, %20 : vector<1x8x18xf32>
    %cst_29 = arith.constant dense<0.000000e+00> : vector<8x18xf32>
    %22 = vector.multi_reduction <add>, %21, %cst_29 [0] : vector<1x8x18xf32> to vector<8x18xf32>
    %cst_30 = arith.constant dense<0.000000e+00> : vector<8xf32>
    %23 = vector.multi_reduction <add>, %22, %cst_30 [1] : vector<8x18xf32> to vector<8xf32>
    %24 = vector.shape_cast %23 : vector<8xf32> to vector<8x1xf32>
    %25 = arith.mulf %21, %21 : vector<1x8x18xf32>
    %cst_31 = arith.constant dense<0.000000e+00> : vector<8x18xf32>
    %26 = vector.multi_reduction <add>, %25, %cst_31 [0] : vector<1x8x18xf32> to vector<8x18xf32>
    %cst_32 = arith.constant dense<0.000000e+00> : vector<8xf32>
    %27 = vector.multi_reduction <add>, %26, %cst_32 [1] : vector<8x18xf32> to vector<8xf32>
    %28 = vector.shape_cast %27 : vector<8xf32> to vector<8x1xf32>
    %c0_33 = arith.constant 0 : index
    %c0_34 = arith.constant 0 : index
    %c0_35 = arith.constant 0 : index
    %29 = vector.load %arg4[%c0_33, %c0_34, %c0_35] : memref<1x8x2xf32, #tpu.memory_space<vmem>>, vector<1x8x1xf32>
    %30 = vector.shape_cast %29 : vector<1x8x1xf32> to vector<8x1xf32>
    %31 = vector.shape_cast %24 : vector<8x1xf32> to vector<1x8x1xf32>
    tpu.vector_store %arg4[%c0_33, %c0_34, %c0_35], %31 {strides = array<i32>} : memref<1x8x2xf32, #tpu.memory_space<vmem>>, vector<1x8x1xf32>,
    %c0_36 = arith.constant 0 : index
    %c0_37 = arith.constant 0 : index
    %c1_38 = arith.constant 1 : index
    %32 = vector.load %arg4[%c0_36, %c0_37, %c1_38] : memref<1x8x2xf32, #tpu.memory_space<vmem>>, vector<1x8x1xf32>
    %33 = vector.shape_cast %32 : vector<1x8x1xf32> to vector<8x1xf32>
    %34 = vector.shape_cast %28 : vector<8x1xf32> to vector<1x8x1xf32>
    tpu.vector_store %arg4[%c0_36, %c0_37, %c1_38], %34 {strides = array<i32>} : memref<1x8x2xf32, #tpu.memory_space<vmem>>, vector<1x8x1xf32>,
    %c0_39 = arith.constant 0 : index
    %c0_40 = arith.constant 0 : index
    %c0_41 = arith.constant 0 : index
    %35 = vector.load %arg3[%c0_39, %c0_40, %c0_41] : memref<1x8x18xf32, #tpu.memory_space<vmem>>, vector<1x8x18xf32>
    tpu.vector_store %arg3[%c0_39, %c0_40, %c0_41], %21 {strides = array<i32>} : memref<1x8x18xf32, #tpu.memory_space<vmem>>, vector<1x8x18xf32>,
    return
  }
  func.func @transform_0(%arg0: i32) -> (i32, i32, i32) {
    %c0_i32 = arith.constant 0 : i32
    %c0_i32_0 = arith.constant 0 : i32
    %c0_i32_1 = arith.constant 0 : i32
    return %arg0, %c0_i32, %c0_i32_0 : i32, i32, i32
  }
  func.func @transform_1(%arg0: i32) -> (i32, i32, i32) {
    %c0_i32 = arith.constant 0 : i32
    %c0_i32_0 = arith.constant 0 : i32
    %c0_i32_1 = arith.constant 0 : i32
    %c0_i32_2 = arith.constant 0 : i32
    return %c0_i32, %c0_i32_0, %c0_i32_1 : i32, i32, i32
  }
  func.func @transform_2(%arg0: i32) -> (i32, i32, i32) {
    %c0_i32 = arith.constant 0 : i32
    %c0_i32_0 = arith.constant 0 : i32
    %c0_i32_1 = arith.constant 0 : i32
    return %arg0, %c0_i32, %c0_i32_0 : i32, i32, i32
  }
  func.func @transform_3(%arg0: i32) -> (i32, i32, i32) {
    %c0_i32 = arith.constant 0 : i32
    %c0_i32_0 = arith.constant 0 : i32
    %c0_i32_1 = arith.constant 0 : i32
    return %arg0, %c0_i32, %c0_i32_0 : i32, i32, i32
  }
}

module attributes {stable_mosaic.version = 11 : i64} {
  func.func @_bn_act_kernel(%arg0: i32, %arg1: memref<1x8x18xf32, #tpu.memory_space<vmem>>, %arg2: memref<8x1xf32, #tpu.memory_space<vmem>>, %arg3: memref<8x1xf32, #tpu.memory_space<vmem>>, %arg4: memref<8x1xf32, #tpu.memory_space<vmem>>, %arg5: memref<1x8x16xf32, #tpu.memory_space<vmem>>) attributes {dimension_semantics = [#tpu.dimension_semantics<parallel>], iteration_bounds = array<i64: 2>, scalar_prefetch = 0 : i64, scratch_operands = 0 : i64, tpu.core_type = #tpu.core_type<tc>, window_params = [{transform_indices = @transform_0, window_bounds = array<i64: 1, 8, 18>}, {pipeline_mode = #tpu.pipeline_mode<synchronous>, transform_indices = @transform_1, window_bounds = array<i64: 8, 1>}, {pipeline_mode = #tpu.pipeline_mode<synchronous>, transform_indices = @transform_2, window_bounds = array<i64: 8, 1>}, {pipeline_mode = #tpu.pipeline_mode<synchronous>, transform_indices = @transform_3, window_bounds = array<i64: 8, 1>}, {transform_indices = @transform_4, window_bounds = array<i64: 1, 8, 16>}]} {
    %c0 = arith.constant 0 : index
    %c0_0 = arith.constant 0 : index
    %c1 = arith.constant 1 : index
    %0 = vector.load %arg1[%c0, %c0_0, %c1] : memref<1x8x18xf32, #tpu.memory_space<vmem>>, vector<1x8x16xf32>
    %c0_1 = arith.constant 0 : index
    %c0_2 = arith.constant 0 : index
    %1 = vector.load %arg2[%c0_1, %c0_2] : memref<8x1xf32, #tpu.memory_space<vmem>>, vector<8x1xf32>
    %2 = vector.shape_cast %1 : vector<8x1xf32> to vector<1x8x1xf32>
    %3 = vector.broadcast %2 : vector<1x8x1xf32> to vector<1x8x16xf32>
    %4 = arith.mulf %0, %3 : vector<1x8x16xf32>
    %c0_3 = arith.constant 0 : index
    %c0_4 = arith.constant 0 : index
    %5 = vector.load %arg3[%c0_3, %c0_4] : memref<8x1xf32, #tpu.memory_space<vmem>>, vector<8x1xf32>
    %6 = vector.shape_cast %5 : vector<8x1xf32> to vector<1x8x1xf32>
    %7 = vector.broadcast %6 : vector<1x8x1xf32> to vector<1x8x16xf32>
    %8 = arith.addf %4, %7 : vector<1x8x16xf32>
    %cst = arith.constant 0.000000e+00 : f32
    %9 = vector.broadcast %cst : f32 to vector<1x8x16xf32>
    %10 = arith.cmpf ogt, %8, %9 : vector<1x8x16xf32>
    %c0_5 = arith.constant 0 : index
    %c0_6 = arith.constant 0 : index
    %11 = vector.load %arg4[%c0_5, %c0_6] : memref<8x1xf32, #tpu.memory_space<vmem>>, vector<8x1xf32>
    %12 = vector.shape_cast %11 : vector<8x1xf32> to vector<1x8x1xf32>
    %13 = vector.broadcast %12 : vector<1x8x1xf32> to vector<1x8x16xf32>
    %14 = arith.mulf %13, %8 : vector<1x8x16xf32>
    %15 = arith.select %10, %8, %14 : vector<1x8x16xi1>, vector<1x8x16xf32>
    %c0_7 = arith.constant 0 : index
    %c0_8 = arith.constant 0 : index
    %c0_9 = arith.constant 0 : index
    %16 = vector.load %arg5[%c0_7, %c0_8, %c0_9] : memref<1x8x16xf32, #tpu.memory_space<vmem>>, vector<1x8x16xf32>
    tpu.vector_store %arg5[%c0_7, %c0_8, %c0_9], %15 {strides = array<i32>} : memref<1x8x16xf32, #tpu.memory_space<vmem>>, vector<1x8x16xf32>,
    return
  }
  func.func @transform_0(%arg0: i32) -> (i32, i32, i32) {
    %c0_i32 = arith.constant 0 : i32
    %c0_i32_0 = arith.constant 0 : i32
    %c0_i32_1 = arith.constant 0 : i32
    return %arg0, %c0_i32, %c0_i32_0 : i32, i32, i32
  }
  func.func @transform_1(%arg0: i32) -> (i32, i32) {
    %c0_i32 = arith.constant 0 : i32
    %c0_i32_0 = arith.constant 0 : i32
    %c0_i32_1 = arith.constant 0 : i32
    return %c0_i32, %c0_i32_0 : i32, i32
  }
  func.func @transform_2(%arg0: i32) -> (i32, i32) {
    %c0_i32 = arith.constant 0 : i32
    %c0_i32_0 = arith.constant 0 : i32
    %c0_i32_1 = arith.constant 0 : i32
    return %c0_i32, %c0_i32_0 : i32, i32
  }
  func.func @transform_3(%arg0: i32) -> (i32, i32) {
    %c0_i32 = arith.constant 0 : i32
    %c0_i32_0 = arith.constant 0 : i32
    %c0_i32_1 = arith.constant 0 : i32
    return %c0_i32, %c0_i32_0 : i32, i32
  }
  func.func @transform_4(%arg0: i32) -> (i32, i32, i32) {
    %c0_i32 = arith.constant 0 : i32
    %c0_i32_0 = arith.constant 0 : i32
    %c0_i32_1 = arith.constant 0 : i32
    return %arg0, %c0_i32, %c0_i32_0 : i32, i32, i32
  }
}

</mosaic_0001>

<bundles_post_ra>
// kernel: conv_batch_chomp_relu.3
= control target key start
LH: loop header
LB: loop body
LE: loop exit
PB: predicated region body
PF: predicated region fallthrough
CT: control target
= control target key end

     0   :  { %9 = vsyncpa [#allocation3], 0  ;;  %s536_s0 = inlined_call_operand.vmem [shape: f32[2,8,18], index: 0, kind: input, shape index: {}]   ;;  %s537_s1 = inlined_call_operand.vmem [shape: f32[8,1], index: 1, kind: input, shape index: {}]   ;;  %s538_s2 = inlined_call_operand.vmem [shape: f32[8,1], index: 2, kind: input, shape index: {}]   ;;  %s539_s3 = inlined_call_operand.vmem [shape: f32[8,1], index: 3, kind: input, shape index: {}]   ;;  %s540_s4 = inlined_call_operand.hbm [shape: f32[2,8,16], index: 4, kind: output, shape index: {}]  }
   0x1   :  { %11 = vsyncpa [#allocation3 + $0x1], 0  ;;  %s442_s15 = smov 0   ;;  %s444_s16 = smov 0  }
   0x2   :  { %s446_s17 = smov 0   ;;  %s448_s18 = smov 0  }
   0x3 LB: > { %s463_s19 = sadd.s32 4294967295, %s413_s18   ;;  %s298_s20 = sadd.s32 4294967294, %s413_s18   ;;  %s413_s18 = sphi %s448_s18, %s546_s18   ;;  %s409_s17 = sphi %s446_s17, %s545_s17   ;;  %s405_s16 = sphi %s444_s16, %s544_s16   ;;  %s401_s15 = sphi %s442_s15, %s543_s15  }
   0x4   : > { %s467_s21 = sadd.s32 1, %s413_s18   ;;  %s113_s22 = sadd.s32 1, %s409_s17 }
   0x5   : > { %s110_s23 = ssub.s32 %s413_s18, %s467_s21  ;;  %p123_p0 = scmp.ne.s32.totalorder %s409_s17, %s405_s16 }
   0x6   : > { %p111_p1 = scmp.eq.s32.totalorder %s110_s23, 0  ;;  %p124_p2 = scmp.eq.s32.totalorder %s463_s19, 1 }
   0x7   : > { %p129_p3 = scmp.ne.s32.totalorder %s405_s16, %s401_s15  ;;  %p130_p4 = scmp.eq.s32.totalorder %s298_s20, 1 }
   0x8   : > { %s478_s24 = scalar_select %p111_p1, %s409_s17, %s113_s22  }
   0x9   : > { %p480_p5 = por %p124_p2, %p123_p0  ;;  %p484_p6 = por %p130_p4, %p129_p3 }
   0xa   : > { %p301_p7 = scmp.ge.s32.totalorder %s413_s18, 1  ;;  %p164_p8 = scmp.lt.s32.totalorder %s413_s18, 3 }
   0xc   : > { %p165_p9 = pnand %p301_p7, %p164_p8 }
   0xd   : > { %p189_p10 = scmp.lt.s32.totalorder (!%p165_p9), %s463_s19, 1  ;;  %s416_s12 = smov (!%p165_p9), 127  }
   0xe   : > { %168 = sbr.rel (%p165_p9) target bundleno = 267 (0x10b), region = 36  ;;  %s186_s13 = sand.u32 (!%p165_p9), 1, %s405_s16  }
   0xf   : > { %s302_s14 = sshll.u32 (!%p165_p9), %s186_s13, 3  ;;  %s305_s20 = sshll.u32 (!%p165_p9), %s463_s19, 3 }
  0x10   : > { %s234_s27 = scalar_lea.hbm (!%p165_p9), %s540_s4, %s305_s20  ;;  %s188_s28 = scalar_lea.vmem (!%p165_p9), [#allocation2], %s302_s14 }
  0x11   : > { %s236_s29 = sshll.u32 (!%p165_p9), %s188_s28, 4  ;;  %s238_s30 = sshll.u32 (!%p165_p9), %s234_s27, 4  ;;  %s237_s29 = int_to_ptr.vmem [resolvable:$true] %s236_s29  ;;  %s239_s30 = int_to_ptr.hbm [resolvable:$true] %s238_s30 }
  0x12   : > { %s224_s5 = scalar_lea.sflag (!%p165_p9), [#allocation3], %s186_s13  ;;  %s365_s6 = sshra.s32 (!%p165_p9), %s239_s30, 4  ;;  %s366_s6 = int_to_ptr.hbm [resolvable:$true] %s365_s6 }
  0x13   : > { %v194_v0 = vld [vmem:[%s537_s1] sm:$0xff]  ;;  %v415_v2 = vmov 0   ;;  %s190_s7 = scalar_select %p189_p10, %s463_s19, 1  ;;  %vm221_vm1 = vcmask 130048  }
  0x14   : > { %v209_v1 = vld [vmem:[%s539_s3] sm:$0xff]  ;;  %349 = vset.pattern.permute.xlu0 %v415_v2  ;;  %350 = vset.pattern.permute.xlu1 %v415_v2  ;;  %s371_s9 = scalar_lea.hbm %s540_s4, 16  ;;  %p372_p0 = scmp.lt.s32.totalorder %s366_s6, %s540_s4 }
  0x15   : > { %197 = vperm.xlu0 %349, %v194_v0   ;;  %212 = vperm.xlu1 %350, %v209_v1   ;;  %v201_v3 = vld [vmem:[%s538_s2] sm:$0xff]  ;;  %s303_s8 = sshll.u32 %s190_s7, 3  ;;  %s367_s7 = scalar_lea.hbm %s366_s6, 8 }
  0x16   : > { %s192_s11 = scalar_lea.vmem %s536_s0, %s303_s8  ;;  %p368_p11 = scmp.ne.s32.totalorder %s366_s6, %s367_s7 }
  0x17   : > { %v193_v5 = vld [vmem:[%s192_s11] sm:$0xff]  ;;  %p373_p1 = scmp.lt.s32.totalorder %s371_s9, %s367_s7 }
  0x18   : > { %p369_p12 = pnand %p368_p11, %p480_p5 }
  0x19   : > { %p374_p2 = por %p373_p1, %p372_p0 }
  0x1a   : > { %p370_p13 = pneg %p369_p12 }
  0x1c   : > { %p375_p3 = pnand %p374_p2, %p370_p13 }
  0x1d   : > { %204 = vperm.xlu0 %349, %v201_v3  }
  0x87   : > { %v198_v4 = vpop.permute.xlu0 %197  ;;  %v213_v8 = vpop.permute.xlu1 %212 }
  0x88   : > { %v200_v6 = vmul.f32 %v198_v4, %v193_v5 }
  0x8f   : > { %v205_v7 = vpop.permute.xlu0 %204 }
  0x90   : > { %v207_v9 = vadd.f32 %v205_v7, %v200_v6 }
  0x92   : > { %v215_v10 = vmul.f32 %v213_v8, %v207_v9  ;;  %vm208_vm0 = vcmp.gt.f32.partialorder %v207_v9, 0.0 }
  0x94   : > { %v216_v11 = vsel %vm208_vm0, %v207_v9, %v215_v10 }
  0x95   : > { %218 = vrot.lane.b32.xlu1 %v216_v11, %s416_s12 }
 0x107   : > { %v219_v12 = vpop.permute.xlu1 %218 }
 0x108   : > { %222 = vst.msk [vmem:[%s188_s28] sm:$0xff] %vm221_vm1, %v219_v12 }
 0x109   : > { %378 = shalt.err (!%p375_p3)
}
 0x10a   : > { %308 = dma.vmem_to_hbm [thread:$0]  (%p480_p5), %s237_s29, 128, %s239_s30, %s224_s5  }
 0x10b PF: > { %p314_p4 = scmp.ge.s32.totalorder %s413_s18, 2  ;;  %s250_s12 = sand.u32 1, %s401_s15  }
 0x10c   : > { %s251_s13 = scalar_lea.sflag [#allocation3], %s250_s12 }
 0x10d   : > { %p311_p7 = pnand %p314_p4, %p484_p6 }
 0x10f   : > { %p312_p8 = pneg %p311_p7 }
 0x111   : > { %396 = dma.done.wait (%p312_p8), %s251_s13, 128  }
 0x112   : > { %398 = vsyncadd (%p312_p8), %s251_s13, 4294967168  ;;  %p14_p9 = scmp.ge.s32.totalorder %s467_s21, 4   ;;  %s543_s15 = smov %s405_s16 }
 0x113   : > { %s544_s16 = smov %s409_s17  ;;  %s545_s17 = smov %s478_s24 }
 0x114   : > { %s546_s18 = smov %s467_s21  ;;  %16 = sbr.rel (!%p14_p9) target bundleno = 3 (0x3), region = 71 }
 0x119   :  { %257 = vsyncpa [#allocation3], 1 }
 0x11a   :  { %259 = vsyncpa [#allocation3 + $0x1], 1 }

// kernel: conv_batch_chomp_relu.2
= control target key start
LH: loop header
LB: loop body
LE: loop exit
PB: predicated region body
PF: predicated region fallthrough
CT: control target
= control target key end

     0   :  { %s442_s12 = smov 0   ;;  %s478_s0 = inlined_call_operand.vmem [shape: f32[2,4,16], index: 0, kind: input, shape index: {}]   ;;  %s479_s1 = inlined_call_operand.vmem [shape: f32[3,8,4], index: 1, kind: input, shape index: {}]   ;;  %s480_s2 = inlined_call_operand.vmem [shape: f32[2,8,18], index: 2, kind: output, shape index: {0}]   ;;  %s481_s3 = inlined_call_operand.vmem [shape: f32[2,8,2], index: 3, kind: output, shape index: {1}]  }
   0x1 LB: > { %s380_s13 = sadd.s32 4294967295, %s416_s12   ;;  %p384_p0 = scmp.ge.s32.totalorder %s416_s12, 1  ;;  %s416_s12 = sphi %s442_s12, %s14_s12  }
   0x2   : > { %p139_p1 = scmp.lt.s32.totalorder %s416_s12, 3 }
   0x4   : > { %p140_p2 = pnand %p384_p0, %p139_p1 }
   0x5   : > { %p165_p3 = scmp.lt.s32.totalorder (!%p140_p2), %s380_s13, 1  ;;  %s419_s18 = smov (!%p140_p2), 2  }
   0x6   : > { %143 = sbr.rel (%p140_p2) target bundleno = 508 (0x1fc), region = 28  ;;  %s420_s19 = smov (!%p140_p2), 126  }
   0x7   : > { %s421_s20 = smov (!%p140_p2), 127  }
   0xb   : > { %vm177_vm0 = vcmask 11264   ;;  %vm179_vm1 = vcmask 158864   ;;  %v418_v0 = vmov 0.0   ;;  %s483_s13 = smov (!%p165_p3, %s380_s13), 1  ;;  %vm186_vm2 = vcmask 142352   ;;  %v189_v6 = vld [vmem:[%s479_s1] sm:$0xff] }
   0xc   : > { %178 = vst.msk [vmem:[#allocation2] sm:$0xf] %vm177_vm0, %v418_v0  ;;  %s385_s14 = sshll.u32 %s483_s13, 2  ;;  %vm200_vm3 = vcmask 1043456   ;;  %vm196_vm4 = vcmask 31744   ;;  %v393_v7 = vld [vmem:[%s479_s1 + $0x10] sm:$0xff] }
   0xd   : > { %180 = vst.msk [vmem:[#allocation2] sm:$0xf] %vm179_vm1, %v418_v0  ;;  %s168_s17 = scalar_lea.vmem %s478_s0, %s385_s14  ;;  %v388_v8 = vld [vmem:[%s479_s1 + $0x8] sm:$0xff]  ;;  %s386_s27 = sshll.u32 %s483_s13, 3  ;;  %vm282_vm5 = vcmask 146432   ;;  %vm291_vm6 = vcmask 7168  }
   0xe   : > { %v181_v1 = vld [vmem:[%s168_s17] sm:$0xf]  ;;  %s172_s30 = scalar_lea.vmem %s480_s2, %s386_s27  ;;  %s176_s6 = scalar_lea.vmem %s481_s3, %s386_s27  ;;  %vm293_vm7 = vcmask 15368  }
   0xf   : > { %183 = vrot.lane.b32.xlu0 %v181_v1, %s419_s18 }
  0x81   : > { %v184_v2 = vpop.permute.xlu0 %183 }
  0x82   : > { %187 = vst.msk [vmem:[#allocation2] sm:$0xf] %vm186_vm2, %v184_v2 }
  0x89   : > { %v249_v3 = vld [vmem:[#allocation2] sm:$0xf] }
  0x8a   : > { %v190_v4 = vld [vmem:[#allocation2] sm:$0xf]  ;;  %253 = vrot.lane.b32.xlu0 %v249_v3, %s420_s19 }
  0x8b   : > { %v188_v5 = vld [vmem:[#allocation2] sm:$0xf]  ;;  %194 = vrot.lane.b32.xlu1 %v190_v4, %s421_s20 }
  0x8c   : > { %391 = vmatpush.msk.msra.mxu1 %vm200_vm3, %v188_v5 }
  0x8d   : > { %392 = vmatmul.msk.f32.vlgmr.msra.gmra.mxu1 %vm196_vm4, %v189_v6 }
  0xfc   : > { %v254_v9 = vpop.permute.xlu0 %253 }
  0xfd   : > { %v195_v10 = vpop.permute.xlu1 %194  ;;  %394 = vmatpush.msk.msra.mxu2 %vm200_vm3, %v254_v9 }
  0xfe   : > { %389 = vmatpush.msk.msra.mxu0 %vm200_vm3, %v195_v10  ;;  %395 = vmatmul.msk.f32.vlgmr.msra.gmra.mxu2 %vm196_vm4, %v393_v7 }
  0xff   : > { %390 = vmatmul.msk.f32.vlgmr.msra.gmra.mxu0 %vm196_vm4, %v388_v8 }
 0x10a   : > { %v246_v12 = vpop.f32.mrf.mxu1 }
 0x17c   : > { %v220_v11 = vpop.f32.mrf.mxu0 }
 0x17d   : > { %v247_v13 = vadd.f32 %v246_v12, %v220_v11 }
 0x181   : > { %v277_v14 = vpop.f32.mrf.mxu2 }
 0x182   : > { %v280_v15 = vadd.f32 %v277_v14, %v247_v13 }
 0x184   : > { %v283_v16 = vsel %vm282_vm5, %v280_v15, 0.0  ;;  %295 = vst.msk [vmem:[%s172_s30] sm:$0xff] %vm282_vm5, %v280_v15  ;;  %v286_v17 = vmul.f32 %v280_v15, %v280_v15 }
 0x185   : > { %284 = vadd.xlane.f32.xlu1 %v283_v16 }
 0x186   : > { %v288_v18 = vsel %vm282_vm5, %v286_v17, 0.0 }
 0x187   : > { %289 = vadd.xlane.f32.xlu2 %v288_v18 }
 0x1f8   : > { %v285_v19 = vpop.xlane.xlu1 %284 }
 0x1f9   : > { %292 = vst.msk [vmem:[%s176_s6] sm:$0xff] %vm291_vm6, %v285_v19 }
 0x1fa   : > { %v290_v20 = vpop.xlane.xlu2 %289 }
 0x1fb   : > { %294 = vst.msk [vmem:[%s176_s6] sm:$0xff] %vm293_vm7, %v290_v20 }
 0x1fc PF: > { %s14_s12 = sadd.s32 1, %s416_s12  }
 0x1fd   : > { %p11_p4 = scmp.ge.s32.totalorder %s14_s12, 4  }
 0x1ff   :  { %13 = sbr.rel (!%p11_p4) target bundleno = 1 (0x1), region = 72 }

</bundles_post_ra>
